<compile_context>
chip_gen: v7x
topology: tpu7x:2x2x1
jax: 0.10.0
libtpu: 0.0.40
codegen_flags: <defaults>
</compile_context>

<pallas_src>
import math

import jax
import jax.numpy as jnp
import numpy as np
from jax.experimental import pallas as pl
from jax.experimental.pallas import tpu as pltpu


# ----------------------------------------------------------------------------
# Config (small synthetic shapes consistent with the module's __init__)
# ----------------------------------------------------------------------------
B = 2                      # batch
T = 8                      # sequence length
H = 32                     # num_embed_hidden
P = 16                     # num_attention_project
N_BIAS = 17                # config.n (learnable relative bias length, odd)
TOK_TRUNC = 16             # config.token_sequence_truncation (>= T)
REL_WINDOW = 3             # relative_attention window

BT = B * T
NEG_BIG = -1e30            # finite "minus infinity" for masking


def _r8(n: int) -> int:
    return ((n + 7) // 8) * 8


# Row offsets inside the [R_TOT, H] parameter slab.
# Every block starts at a multiple of 8 (sublane-tile aligned) and at lane 0.
R_WQ = 0                       # [H, P]   (pre-scaled by 1/sqrt(P))
R_WK = R_WQ + H                # [H, P]
R_WV = R_WK + H                # [H, P]
R_WO = _r8(R_WV + H)           # [P, H]
R_BQ = _r8(R_WO + P)           # [1, P]   (pre-scaled by 1/sqrt(P))
R_BK = R_BQ + 8                # [1, P]
R_BV = R_BK + 8                # [1, P]
R_BO = R_BV + 8                # [1, H]
R_AB = R_BO + 8                # [BT, BT] combined additive attention bias
R_TOT = _r8(R_AB + BT)


def circulant_mask(n: int, window: int) -> np.ndarray:
    """NumPy port of the PyTorch circulant_mask helper."""
    if window >= n:
        return np.ones((n, n), dtype=np.float32)
    m = np.zeros((n, n), dtype=np.float32)
    offsets = [0] + [i for i in range(window + 1)] + [-i for i in range(window + 1)]
    for off in offsets:
        idx = np.arange(n - abs(off))
        if off >= 0:
            m[idx, idx + off] = 1.0
        else:
            m[idx - off, idx] = 1.0
    return m


# ----------------------------------------------------------------------------
# Pallas kernel: whole batch in one shot (no grid)
# ----------------------------------------------------------------------------
def _self_attn_kernel(x_ref, maskb_ref, p_ref, out_ref):
    x = x_ref[...]                                                   # [BT, H]

    # Static, 8-aligned, lane-0 views into the parameter slab (no relayout).
    wq = p_ref[R_WQ:R_WQ + H, 0:P]
    wk = p_ref[R_WK:R_WK + H, 0:P]
    wv = p_ref[R_WV:R_WV + H, 0:P]
    wo = p_ref[R_WO:R_WO + P, :]
    bq = p_ref[R_BQ:R_BQ + 1, 0:P]
    bk = p_ref[R_BK:R_BK + 1, 0:P]
    bv = p_ref[R_BV:R_BV + 1, 0:P]
    bo = p_ref[R_BO:R_BO + 1, :]
    a_bias = p_ref[R_AB:R_AB + BT, 0:BT]

    # Three separate Q/K/V projections (each a single MXU pass at these shapes;
    # 1/sqrt(P) is already folded into wq/bq).
    q = jnp.dot(x, wq, preferred_element_type=jnp.float32) + bq      # [BT, P]
    k = jnp.dot(x, wk, preferred_element_type=jnp.float32) + bk      # [BT, P]
    v = jnp.dot(x, wv, preferred_element_type=jnp.float32) + bv      # [BT, P]

    # Attention scores over the flattened batch*seq axis (q @ k^T).
    # Cross-batch entries are killed by the -1e30 block-diagonal term folded
    # into a_bias together with the relative window mask + learnable bias.
    scores = jax.lax.dot_general(q, k, (((1,), (1,)), ((), ())),
                                 preferred_element_type=jnp.float32)  # [BT, BT]
    scores = scores + maskb_ref[...] + a_bias

    # Numerically stable softmax; exact reciprocal on the EUP (off VALU path).
    m = jnp.max(scores, axis=-1, keepdims=True)
    e = jnp.exp(scores - m)
    probs = e * pl.reciprocal(jnp.sum(e, axis=-1, keepdims=True), approx=False)

    # Weighted values + output projection; direct [BT, H] store (no lane pad).
    ctx = jnp.dot(probs, v, preferred_element_type=jnp.float32)       # [BT, P]
    out = jnp.dot(ctx, wo, preferred_element_type=jnp.float32) + bo   # [BT, H]
    out_ref[...] = out.astype(out_ref.dtype)


# ----------------------------------------------------------------------------
# Parameter preprocessing (done once — depends only on the module parameters)
# ----------------------------------------------------------------------------
def prepare_param_slab(params, bias_vec, b, t):
    inv_sqrt_p = 1.0 / math.sqrt(P)

    # Learnable relative-position bias B[i, j] = bias[n//2 - i + j].
    ii, jj = jnp.meshgrid(jnp.arange(t), jnp.arange(t), indexing="ij")
    bias_mat = bias_vec[N_BIAS // 2 - ii + jj]                        # [T, T]
    rel_mask = jnp.asarray(circulant_mask(TOK_TRUNC, REL_WINDOW))[:t, :t]
    rel_bias = bias_mat + jnp.where(rel_mask == 0.0, NEG_BIG, 0.0)    # [T, T]

    # Block-diagonal expansion over batch: cross-batch keys get -1e30.
    eye_b = jnp.eye(b, dtype=jnp.float32)
    a_bias = (eye_b[:, None, :, None] * rel_bias[None, :, None, :]
              + (1.0 - eye_b)[:, None, :, None] * NEG_BIG).reshape(b * t, b * t)

    slab = jnp.zeros((R_TOT, H), jnp.float32)
    slab = slab.at[R_WQ:R_WQ + H, :P].set(params["wq"] * inv_sqrt_p)
    slab = slab.at[R_WK:R_WK + H, :P].set(params["wk"])
    slab = slab.at[R_WV:R_WV + H, :P].set(params["wv"])
    slab = slab.at[R_WO:R_WO + P, :H].set(params["wo"])
    slab = slab.at[R_BQ, :P].set(params["bq"][0] * inv_sqrt_p)
    slab = slab.at[R_BK, :P].set(params["bk"][0])
    slab = slab.at[R_BV, :P].set(params["bv"][0])
    slab = slab.at[R_BO, :H].set(params["bo"][0])
    slab = slab.at[R_AB:R_AB + b * t, :b * t].set(a_bias)
    return slab


# ----------------------------------------------------------------------------
# Wrapper (jitted so the mask prep / reshapes fuse around the pallas_call)
# ----------------------------------------------------------------------------
def self_attention_pallas(x, attention_mask, param_slab):
    """x: [B, T, H] f32, attention_mask: [B, T] f32, param_slab: [R_TOT, H] f32."""
    b, t, h = x.shape
    bt = b * t
    x2d = x.reshape(bt, h)                                  # free reshape
    mask_bias = ((1.0 - attention_mask) * -10000.0).reshape(bt, 1)

    out2d = pl.pallas_call(
        _self_attn_kernel,
        out_shape=jax.ShapeDtypeStruct((bt, h), x.dtype),
        in_specs=[
            pl.BlockSpec(memory_space=pltpu.MemorySpace.VMEM),   # x2d
            pl.BlockSpec(memory_space=pltpu.MemorySpace.VMEM),   # mask bias
            pl.BlockSpec(memory_space=pltpu.MemorySpace.VMEM),   # param slab
        ],
        out_specs=pl.BlockSpec(memory_space=pltpu.MemorySpace.VMEM),
    )(x2d, mask_bias, param_slab)

    return out2d.reshape(b, t, h)


self_attention_pallas_jit = jax.jit(self_attention_pallas)


# ----------------------------------------------------------------------------
# Pure-JAX reference (mirrors the PyTorch forward exactly)
# ----------------------------------------------------------------------------
def self_attention_ref(x, attention_mask, params, bias_vec):
    t = x.shape[1]
    q = x @ params["wq"] + params["bq"]
    k = x @ params["wk"] + params["bk"]
    v = x @ params["wv"] + params["bv"]
    scores = jnp.einsum("btp,bsp->bts", q, k) / math.sqrt(P)
    scores = scores + (1.0 - attention_mask[..., None]) * -10000.0
    rel_mask = jnp.asarray(circulant_mask(TOK_TRUNC, REL_WINDOW))[:t, :t]
    scores = jnp.where(rel_mask[None] == 0.0, -jnp.inf, scores)
    ii, jj = jnp.meshgrid(jnp.arange(t), jnp.arange(t), indexing="ij")
    scores = scores + bias_vec[N_BIAS // 2 - ii + jj][None]
    probs = jax.nn.softmax(scores, axis=-1)
    out = jnp.einsum("bts,bsp->btp", probs, v)
    return out @ params["wo"] + params["bo"]


# ----------------------------------------------------------------------------
# Main
# ----------------------------------------------------------------------------
if __name__ == "__main__":
    key = jax.random.PRNGKey(0)
    keys = jax.random.split(key, 12)

    def linear_init(kw, kb, fan_in, fan_out):
        bound = 1.0 / math.sqrt(fan_in)
        w = jax.random.uniform(kw, (fan_in, fan_out), jnp.float32, -bound, bound)
        b = jax.random.uniform(kb, (1, fan_out), jnp.float32, -bound, bound)
        return w, b

    wq, bq = linear_init(keys[0], keys[1], H, P)
    wk, bk = linear_init(keys[2], keys[3], H, P)
    wv, bv = linear_init(keys[4], keys[5], H, P)
    wo, bo = linear_init(keys[6], keys[7], P, H)

    stdv = 1.0 / math.sqrt(N_BIAS)
    bias_vec = jax.random.uniform(keys[8], (N_BIAS,), jnp.float32, -stdv, stdv)

    params = dict(wq=wq, bq=bq, wk=wk, bk=bk, wv=wv, bv=bv, wo=wo, bo=bo)

    # Inputs
    x = jax.random.normal(keys[9], (B, T, H), jnp.float32)
    attention_mask = jnp.ones((B, T), jnp.float32).at[:, T - 2:].set(0.0)

    # Call-invariant parameter slab (built once).
    param_slab = jax.block_until_ready(prepare_param_slab(params, bias_vec, B, T))

    out = self_attention_pallas_jit(x, attention_mask, param_slab)
    out = jax.block_until_ready(out)

    ref = self_attention_ref(x, attention_mask, params, bias_vec)
    np.testing.assert_allclose(np.asarray(out), np.asarray(ref), rtol=2e-3, atol=2e-3)

    print("KERNEL_OK")
</pallas_src>

<mosaic_0001>
module attributes {stable_mosaic.version = 11 : i64} {
  func.func @_self_attn_kernel(%arg0: memref<16x32xf32, #tpu.memory_space<vmem>>, %arg1: memref<16x1xf32, #tpu.memory_space<vmem>>, %arg2: memref<160x32xf32, #tpu.memory_space<vmem>>, %arg3: memref<16x32xf32, #tpu.memory_space<vmem>>) attributes {dimension_semantics = [], scalar_prefetch = 0 : i64, scratch_operands = 0 : i64, tpu.core_type = #tpu.core_type<tc>} {
    %c0 = arith.constant 0 : index
    %c0_0 = arith.constant 0 : index
    %0 = vector.load %arg0[%c0, %c0_0] : memref<16x32xf32, #tpu.memory_space<vmem>>, vector<16x32xf32>
    %c0_1 = arith.constant 0 : index
    %c0_2 = arith.constant 0 : index
    %1 = vector.load %arg2[%c0_1, %c0_2] : memref<160x32xf32, #tpu.memory_space<vmem>>, vector<32x16xf32>
    %c32 = arith.constant 32 : index
    %c0_3 = arith.constant 0 : index
    %2 = vector.load %arg2[%c32, %c0_3] : memref<160x32xf32, #tpu.memory_space<vmem>>, vector<32x16xf32>
    %c64 = arith.constant 64 : index
    %c0_4 = arith.constant 0 : index
    %3 = vector.load %arg2[%c64, %c0_4] : memref<160x32xf32, #tpu.memory_space<vmem>>, vector<32x16xf32>
    %c96 = arith.constant 96 : index
    %c0_5 = arith.constant 0 : index
    %4 = vector.load %arg2[%c96, %c0_5] : memref<160x32xf32, #tpu.memory_space<vmem>>, vector<16x32xf32>
    %c112 = arith.constant 112 : index
    %c0_6 = arith.constant 0 : index
    %5 = vector.load %arg2[%c112, %c0_6] : memref<160x32xf32, #tpu.memory_space<vmem>>, vector<1x16xf32>
    %c120 = arith.constant 120 : index
    %c0_7 = arith.constant 0 : index
    %6 = vector.load %arg2[%c120, %c0_7] : memref<160x32xf32, #tpu.memory_space<vmem>>, vector<1x16xf32>
    %c128 = arith.constant 128 : index
    %c0_8 = arith.constant 0 : index
    %7 = vector.load %arg2[%c128, %c0_8] : memref<160x32xf32, #tpu.memory_space<vmem>>, vector<1x16xf32>
    %c136 = arith.constant 136 : index
    %c0_9 = arith.constant 0 : index
    %8 = vector.load %arg2[%c136, %c0_9] : memref<160x32xf32, #tpu.memory_space<vmem>>, vector<1x32xf32>
    %c144 = arith.constant 144 : index
    %c0_10 = arith.constant 0 : index
    %9 = vector.load %arg2[%c144, %c0_10] : memref<160x32xf32, #tpu.memory_space<vmem>>, vector<16x16xf32>
    %cst = arith.constant dense<0.000000e+00> : vector<16x16xf32>
    %10 = tpu.matmul %0, %1, %cst {dimension_numbers = #tpu.dot_dimension_numbers<[1], [0], [0], [1], [0, 0, 1, 1], [], []>} : vector<16x32xf32>, vector<32x16xf32>, vector<16x16xf32> -> vector<16x16xf32>
    %11 = vector.broadcast %5 : vector<1x16xf32> to vector<16x16xf32>
    %12 = arith.addf %10, %11 : vector<16x16xf32>
    %cst_11 = arith.constant dense<0.000000e+00> : vector<16x16xf32>
    %13 = tpu.matmul %0, %2, %cst_11 {dimension_numbers = #tpu.dot_dimension_numbers<[1], [0], [0], [1], [0, 0, 1, 1], [], []>} : vector<16x32xf32>, vector<32x16xf32>, vector<16x16xf32> -> vector<16x16xf32>
    %14 = vector.broadcast %6 : vector<1x16xf32> to vector<16x16xf32>
    %15 = arith.addf %13, %14 : vector<16x16xf32>
    %cst_12 = arith.constant dense<0.000000e+00> : vector<16x16xf32>
    %16 = tpu.matmul %0, %3, %cst_12 {dimension_numbers = #tpu.dot_dimension_numbers<[1], [0], [0], [1], [0, 0, 1, 1], [], []>} : vector<16x32xf32>, vector<32x16xf32>, vector<16x16xf32> -> vector<16x16xf32>
    %17 = vector.broadcast %7 : vector<1x16xf32> to vector<16x16xf32>
    %18 = arith.addf %16, %17 : vector<16x16xf32>
    %cst_13 = arith.constant dense<0.000000e+00> : vector<16x16xf32>
    %19 = tpu.matmul %12, %15, %cst_13 {dimension_numbers = #tpu.dot_dimension_numbers<[1], [1], [0], [0], [0, 0, 1, 0], [], []>} : vector<16x16xf32>, vector<16x16xf32>, vector<16x16xf32> -> vector<16x16xf32>
    %c0_14 = arith.constant 0 : index
    %c0_15 = arith.constant 0 : index
    %20 = vector.load %arg1[%c0_14, %c0_15] : memref<16x1xf32, #tpu.memory_space<vmem>>, vector<16x1xf32>
    %21 = vector.broadcast %20 : vector<16x1xf32> to vector<16x16xf32>
    %22 = arith.addf %19, %21 : vector<16x16xf32>
    %23 = arith.addf %22, %9 : vector<16x16xf32>
    %cst_16 = arith.constant dense<0xFF800000> : vector<16xf32>
    %24 = vector.multi_reduction <maximumf>, %23, %cst_16 [1] : vector<16x16xf32> to vector<16xf32>
    %25 = vector.shape_cast %24 : vector<16xf32> to vector<16x1xf32>
    %26 = vector.broadcast %25 : vector<16x1xf32> to vector<16x16xf32>
    %27 = arith.subf %23, %26 : vector<16x16xf32>
    %28 = math.exp %27 : vector<16x16xf32>
    %cst_17 = arith.constant dense<0.000000e+00> : vector<16xf32>
    %29 = vector.multi_reduction <add>, %28, %cst_17 [1] : vector<16x16xf32> to vector<16xf32>
    %30 = vector.shape_cast %29 : vector<16xf32> to vector<16x1xf32>
    %31 = tpu.reciprocal %30 : vector<16x1xf32> -> vector<16x1xf32>
    %32 = vector.broadcast %31 : vector<16x1xf32> to vector<16x16xf32>
    %33 = arith.mulf %28, %32 : vector<16x16xf32>
    %cst_18 = arith.constant dense<0.000000e+00> : vector<16x16xf32>
    %34 = tpu.matmul %33, %18, %cst_18 {dimension_numbers = #tpu.dot_dimension_numbers<[1], [0], [0], [1], [0, 0, 1, 1], [], []>} : vector<16x16xf32>, vector<16x16xf32>, vector<16x16xf32> -> vector<16x16xf32>
    %cst_19 = arith.constant dense<0.000000e+00> : vector<16x32xf32>
    %35 = tpu.matmul %34, %4, %cst_19 {dimension_numbers = #tpu.dot_dimension_numbers<[1], [0], [0], [1], [0, 0, 1, 1], [], []>} : vector<16x16xf32>, vector<16x32xf32>, vector<16x32xf32> -> vector<16x32xf32>
    %36 = vector.broadcast %8 : vector<1x32xf32> to vector<16x32xf32>
    %37 = arith.addf %35, %36 : vector<16x32xf32>
    %c0_20 = arith.constant 0 : index
    %c0_21 = arith.constant 0 : index
    %38 = vector.load %arg3[%c0_20, %c0_21] : memref<16x32xf32, #tpu.memory_space<vmem>>, vector<16x32xf32>
    tpu.vector_store %arg3[%c0_20, %c0_21], %37 {strides = array<i32>} : memref<16x32xf32, #tpu.memory_space<vmem>>, vector<16x32xf32>,
    return
  }
}

</mosaic_0001>

<bundles_post_ra>
// kernel: self_attention_pallas.1
= control target key start
LH: loop header
LB: loop body
LE: loop exit
PB: predicated region body
PF: predicated region fallthrough
CT: control target
= control target key end

     0   :  { %vm41_vm0 = vcmask 261120   ;;  %s894_s0 = inlined_call_operand.vmem [shape: f32[16,32], index: 0, kind: input, shape index: {}]   ;;  %s895_s1 = inlined_call_operand.vmem [shape: f32[16,1], index: 1, kind: input, shape index: {}]   ;;  %s896_s2 = inlined_call_operand.vmem [shape: f32[160,32], index: 2, kind: input, shape index: {}]   ;;  %s897_s3 = inlined_call_operand.hbm [shape: f32[16,32], index: 3, kind: output, shape index: {}]  }
   0x1   :  { %v21_v0 = vld [vmem:[%s896_s2 + $0x20] sm:$0xff]  ;;  %v22_v1 = vld [vmem:[%s896_s2 + $0x28] sm:$0xff]  ;;  %v23_v2 = vld [vmem:[%s896_s2 + $0x30] sm:$0xff] }
   0x2   :  { %v699_v3 = vpack.c.bf16 %v22_v1, %v21_v0  ;;  %v24_v4 = vld [vmem:[%s896_s2 + $0x38] sm:$0xff]  ;;  %v15_v5 = vld [vmem:[%s894_s0] sm:$0xff]  ;;  %v18_v8 = vld [vmem:[%s896_s2 + $0x8] sm:$0xff] }
   0x3   :  { %v17_v6 = vld [vmem:[%s896_s2] sm:$0xff]  ;;  %v703_v7 = vpack.c.bf16 %v24_v4, %v23_v2  ;;  %656 = vmatprep.mubr.msk.f32.mxu1 %vm41_vm0, %v15_v5  ;;  %v19_v9 = vld [vmem:[%s896_s2 + $0x10] sm:$0xff]  ;;  %645 = vmatprep.mubr.msk.f32.mxu0 %vm41_vm0, %v15_v5  ;;  %v20_v11 = vld [vmem:[%s896_s2 + $0x18] sm:$0xff] }
   0x4   :  { %700 = vmatprep.subr.bf16.mxu1 %v699_v3  ;;  %v691_v10 = vpack.c.bf16 %v18_v8, %v17_v6 }
   0x5   :  { %8 = vsyncpa [#allocation3], 0  ;;  %702 = vmatpush3.bf16.msra.mxu1 %v699_v3  ;;  %v695_v12 = vpack.c.bf16 %v20_v11, %v19_v9  ;;  %v16_v13 = vld [vmem:[%s894_s0 + $0x8] sm:$0xff]  ;;  %v281_v14 = vld [vmem:[%s895_s1] sm:$0xff]  ;;  %v766_v15 = vmov 0   ;;  %vm293_vm1 = vcmask 130048  }
   0x6   :  { %704 = vmatprep.subr.bf16.mxu1 %v703_v7  ;;  %692 = vmatprep.subr.bf16.mxu0 %v691_v10  ;;  %v282_v16 = vld [vmem:[%s895_s1 + $0x8] sm:$0xff]  ;;  %v592_v17 = vld [vmem:[%s896_s2 + $0x78] ss:$0 sm:$0xff]  ;;  %v589_v21 = vld [vmem:[%s896_s2 + $0x70] ss:$0 sm:$0xff]  ;;  %s767_s4 = smov [#allocation2]  }
   0x7   :  { %694 = vmatpush3.bf16.msra.mxu0 %v691_v10  ;;  %733 = vset.pattern.permute.xlu0 %v766_v15  ;;  %vm716_vm2 = vmpackc.low %vm293_vm1, %vm293_vm1  ;;  %v25_v28 = vld [vmem:[%s896_s2 + $0x40] sm:$0xff]  ;;  %v26_v29 = vld [vmem:[%s896_s2 + $0x48] sm:$0xff]  ;;  %s578_s5 = sshll.u32 %s767_s4, 4  ;;  %s579_s5 = int_to_ptr.vmem [resolvable:$true] %s578_s5 }
   0x8   :  { %696 = vmatprep.subr.bf16.mxu0 %v695_v12  ;;  %285 = vperm.xlu0 %733, %v281_v14   ;;  %v27_v30 = vld [vmem:[%s896_s2 + $0x50] sm:$0xff]  ;;  %v707_v31 = vpack.c.bf16 %v26_v29, %v25_v28  ;;  %v28_v32 = vld [vmem:[%s896_s2 + $0x58] sm:$0xff]  ;;  %v595_v57 = vld [vmem:[%s896_s2 + $0x80] ss:$0 sm:$0xff]  ;;  %s742_s6 = scalar_lea.vmem %s579_s5, 256  ;;  %p747_p1 = scmp.lt.s32.totalorder %s579_s5, %s579_s5 }
   0x9   :  { %706 = vmatpush3.bf16.msra.mxu1 %v703_v7  ;;  %v711_v33 = vpack.c.bf16 %v28_v32, %v27_v30  ;;  %v35_v38 = vld [vmem:[%s896_s2 + $0x90] sm:$0xff]  ;;  %v36_v41 = vld [vmem:[%s896_s2 + $0x98] sm:$0xff]  ;;  %v29_v62 = vld [vmem:[%s896_s2 + $0x60] sm:$0xff]  ;;  %p743_p0 = scmp.ne.s32.totalorder %s579_s5, %s742_s6  ;;  %p748_p2 = scmp.lt.s32.totalorder %s742_s6, %s742_s6 }
   0xa   :  { %v30_v63 = vld [vmem:[%s896_s2 + $0x68] sm:$0xff] }
   0xb   :  { %698 = vmatpush3.bf16.msra.mxu0 %v695_v12  ;;  %v725_v0 = vpack.c.bf16 %v30_v63, %v29_v62  ;;  %v604_v9 = vld [vmem:[%s896_s2 + $0x88] ss:$0 sm:$0xff]  ;;  %p749_p3 = por %p748_p2, %p747_p1 }
   0xc   :  { %657 = vmatmul.mubr.msk.f32.vlgmr.msra.gmra.mrb[0].mxu1 %vm41_vm0, %v16_v13  ;;  %290 = vperm.xlu0 %733, %v282_v16  }
   0xd   :  { %708 = vmatprep.subr.bf16.mxu0 %v707_v31  ;;  %p750_p4 = pnand %p749_p3, %p743_p0 }
   0xe   :  { %646 = vmatmul.mubr.msk.f32.vlgmr.msra.gmra.mrb[0].mxu0 %vm41_vm0, %v16_v13 }
   0xf   :  { %667 = vmatprep.mubr.msk.f32.mxu0 %vm41_vm0, %v15_v5  ;;  %710 = vmatpush3.bf16.msra.mxu0 %v707_v31 }
  0x10   :  { %712 = vmatprep.subr.bf16.mxu0 %v711_v33 }
  0x13   :  { %714 = vmatpush3.bf16.msra.mxu0 %v711_v33 }
  0x16   :  { %668 = vmatmul.mubr.msk.f32.vlgmr.msra.gmra.mrb[2].mxu0 %vm41_vm0, %v16_v13 }
  0x87   :  { %v286_v34 = vpop.permute.xlu0 %285 }
  0x8b   :  { %v291_v35 = vpop.permute.xlu0 %290 }
  0xdf   :  { %v658_v18 = vpop.f32.mrb[0].mxu1 }
  0xe0   :  { %v199_v19 = vadd.f32 %v658_v18, %v592_v17  ;;  %v193_v20 = vpop.f32.mrb[1].mxu1 }
  0xe1   :  { %v194_v22 = vadd.f32 %v592_v17, %v193_v20  ;;  %v647_v23 = vpop.f32.mrb[0].mxu0 }
  0xe2   :  { %v114_v24 = vpop.f32.mrb[1].mxu0  ;;  %v120_v27 = vadd.f32 %v647_v23, %v589_v21 }
  0xe3   :  { %v715_v25 = vpack.c.bf16 %v199_v19, %v194_v22  ;;  %v115_v26 = vadd.f32 %v589_v21, %v114_v24 }
  0xe5   :  { %717 = vmatprep.subr.msk.bf16.mxu1 %vm716_vm2, %v715_v25  ;;  %674 = vmatprep.mubr.msk.f32.mxu1 %vm293_vm1, %v115_v26 }
  0xe6   :  { %720 = vmatpush3.bf16.xpose.msk.msra.mxu1 %vm716_vm2, %v715_v25 }
  0xe7   :  { %726 = vmatprep.subr.bf16.mxu1 %v725_v0 }
  0xe9   :  { %v669_v56 = vpop.f32.mrb[2].mxu0 }
  0xea   :  { %v272_v58 = vpop.f32.mrb[3].mxu0  ;;  %v278_v59 = vadd.f32 %v669_v56, %v595_v57 }
  0xeb   :  { %v273_v60 = vadd.f32 %v595_v57, %v272_v58 }
  0xed   :  { %675 = vmatmul.mubr.msk.f32.vlgmr.msra.gmra.mrb[2].mxu1 %vm293_vm1, %v120_v27  ;;  %v721_v61 = vpack.c.bf16 %v278_v59, %v273_v60 }
  0xee   :  { %728 = vmatpush3.bf16.msra.mxu1 %v725_v0 }
  0xef   :  { %722 = vmatprep.subr.bf16.mxu0 %v721_v61 }
  0xf0   :  { %724 = vmatpush3.bf16.msra.mxu0 %v721_v61 }
 0x1c0   :  { %v676_v36 = vpop.f32.mrb[2].mxu1 }
 0x1c1   :  { %v372_v37 = vpop.f32.mrb[3].mxu1  ;;  %v378_v39 = vadd.f32 %v676_v36, %v291_v35 }
 0x1c2   :  { %v373_v40 = vadd.f32 %v372_v37, %v286_v34 }
 0x1c3   :  { %v382_v44 = vadd.f32 %v378_v39, %v36_v41 }
 0x1c4   :  { %v381_v42 = vadd.f32 %v373_v40, %v35_v38 }
 0x1c5   :  { %v386_v45 = vsel %vm293_vm1, %v382_v44, -inf }
 0x1c6   :  { %v383_v43 = vsel %vm293_vm1, %v381_v42, -inf }
 0x1c7   :  { %384 = vmax.xlane.f32.xlu1 %v383_v43 }
 0x1cb   :  { %387 = vmax.xlane.f32.xlu1 %v386_v45 }
 0x254   :  { %v385_v46 = vpop.xlane.xlu1 %384 }
 0x255   :  { %v389_v47 = vsub.f32 %v381_v42, %v385_v46 }
 0x257   :  { %v391_v48 = vmul.f32 1.442695, %v389_v47 }
 0x258   :  { %v388_v49 = vpop.xlane.xlu1 %387 }
 0x259   :  { %734 = vpow2.f32 %v391_v48  ;;  %v390_v50 = vsub.f32 %v382_v44, %v388_v49 }
 0x25b   :  { %v393_v51 = vmul.f32 1.442695, %v390_v50 }
 0x25d   :  { %736 = vpow2.f32 %v393_v51 }
 0x263   :  { %v735_v52 = vpop.eup %734 }
 0x264   :  { %v395_v53 = vsel %vm293_vm1, %v735_v52, 0.0 }
 0x265   :  { %396 = vadd.xlane.f32.xlu0 %v395_v53 }
 0x267   :  { %v737_v54 = vpop.eup %736 }
 0x268   :  { %v398_v55 = vsel %vm293_vm1, %v737_v54, 0.0 }
 0x269   :  { %399 = vadd.xlane.f32.xlu1 %v398_v55 }
 0x2f2   :  { %v397_v1 = vpop.xlane.xlu0 %396 }
 0x2f3   :  { %738 = vrcp.f32 %v397_v1 }
 0x2f6   :  { %v400_v2 = vpop.xlane.xlu1 %399 }
 0x2f7   :  { %740 = vrcp.f32 %v400_v2 }
 0x2fd   :  { %v739_v3 = vpop.eup %738 }
 0x2fe   :  { %v403_v4 = vmul.f32 %v739_v3, %v735_v52 }
 0x300   :  { %681 = vmatprep.mubr.msk.f32.mxu0 %vm293_vm1, %v403_v4 }
 0x301   :  { %v741_v5 = vpop.eup %740 }
 0x302   :  { %v404_v6 = vmul.f32 %v741_v5, %v737_v54 }
 0x304   :  { %682 = vmatmul.mubr.msk.f32.vlgmr.msra.gmra.mrb[4].mxu0 %vm293_vm1, %v404_v6 }
 0x3d7   :  { %v683_v7 = vpop.f32.mrb[4].mxu0 }
 0x3d8   :  { %v477_v8 = vpop.f32.mrb[5].mxu0 }
 0x3d9   :  { %688 = vmatprep.mubr.msk.f32.mxu1 %vm293_vm1, %v477_v8 }
 0x3da   :  { %689 = vmatmul.mubr.msk.f32.vlgmr.msra.gmra.mrb[4].mxu1 %vm293_vm1, %v683_v7 }
 0x4ad   :  { %v690_v10 = vpop.f32.mrb[4].mxu1 }
 0x4ae   :  { %v568_v11 = vadd.f32 %v690_v10, %v604_v9  ;;  %v562_v12 = vpop.f32.mrb[5].mxu1 }
 0x4af   :  { %v563_v13 = vadd.f32 %v604_v9, %v562_v12 }
 0x4b0   :  { %572 = vst.msk [vmem:[#allocation2 + $0x8] sm:$0xff] %vm41_vm0, %v568_v11 }
 0x4b1   :  { %571 = vst.msk [vmem:[#allocation2] sm:$0xff] %vm41_vm0, %v563_v13 }
 0x4b2   :  { %753 = shalt.err (!%p750_p4)
}
 0x4b3   :  { %s754_s8 = scalar_lea.hbm %s897_s3, 256 }
 0x4b4   :  { %p755_p5 = scmp.ne.s32.totalorder %s897_s3, %s754_s8  ;;  %p758_p6 = scmp.lt.u32.totalorder %s754_s8, %s897_s3 }
 0x4b6   :  { %p760_p7 = pnand %p758_p6, %p755_p5 }
 0x4b8   :  { %763 = shalt.err (!%p760_p7)
}
 0x4b9   :  { %s768_s1 = smov 128   ;;  %s769_s12 = smov 8  }
 0x4ba   :  { %584 = dma.vmem_to_hbm [thread:$0]  %s579_s5, 256, %s897_s3, [#allocation3], %s768_s1, %s768_s1, %s769_s12  }
 0x4bb   :  { %764 = dma.done.wait [#allocation3], 256  }
 0x4bc   :  { %765 = vsyncadd [#allocation3], 4294967040 }
 0x4bd   :  { %588 = vsyncpa [#allocation3], 1 }

</bundles_post_ra>
